<compile_context>
chip_gen: v7x
topology: tpu7x:2x2x1
jax: 0.10.0
libtpu: 0.0.40
codegen_flags: <defaults>
</compile_context>

<pallas_src>
import functools

import jax
import jax.numpy as jnp
from jax.experimental import pallas as pl
from jax.experimental.pallas import tpu as pltpu


# ---------------------------------------------------------------------------
# Fused kernel: whole batch in one grid step.
# ---------------------------------------------------------------------------
def _fused_forward_kernel(t_ref,        # (B,) int32, scalar prefetch (SMEM)
                          x0_ref,       # (B, C, HW)      original image
                          prefix_hbm,   # (B, T+1, C, HW) zero-prefixed noise cumsum (HBM)
                          wcat_ref,     # (2*Hd, C)       fused first-layer weight [w1; wt1]
                          bcat_ref,     # (B, 2*Hd, 1)    per-sample bias [b1 + temb_b ; bt1]
                          w2_ref,       # (C, Hd)         Unet output 1x1 conv
                          b2_ref,       # (C, 1)
                          wt2_ref,      # (1, Hd)         Unet_t head projection
                          bt2_ref,      # (1, 1)
                          predx_ref,    # (B, C, HW) out: pred_clean_x
                          predt_ref,    # (1, B)     out: pred_t (lane-dense)
                          nbuf,         # VMEM (B, C, HW) scratch for gathered prefixes
                          sem,          # DMA semaphores (B,)
                          *, batch, hidden, hw):
    B, Hd, HW = batch, hidden, hw

    # 1) Per-sample noise-prefix gather: exactly one contiguous (C, HW) slab per
    #    sample from HBM, indexed by the prefetched timestep t[b].
    copies = []
    for b in range(B):
        cp = pltpu.make_async_copy(prefix_hbm.at[b, t_ref[b]], nbuf.at[b], sem.at[b])
        cp.start()
        copies.append(cp)
    for cp in copies:
        cp.wait()

    # 2) Timestep selection collapsed to one add, then [0,1] -> [-1,1];
    #    lane-stack the batch so everything downstream is (rows, B*HW).
    xn = jnp.concatenate(
        [(x0_ref[b] + nbuf[b]) * 2.0 - 1.0 for b in range(B)], axis=-1)     # (C, B*HW)

    # 3) Fused first 1x1 convs of both heads in ONE MXU matmul.
    # TODO(synk): real Unet / Unet_t architectures are not in the provided source;
    # 1x1-conv MLP stand-ins with additive time embedding are used instead.
    h_pre = jnp.dot(wcat_ref[...], xn, preferred_element_type=jnp.float32)  # (2Hd, B*HW)
    h = jnp.concatenate(
        [jnp.maximum(h_pre[:, b * HW:(b + 1) * HW] + bcat_ref[b], 0.0)
         for b in range(B)], axis=-1)                                       # (2Hd, B*HW)
    h_u = h[:Hd, :]                                                         # Unet hidden
    h_t = h[Hd:, :]                                                         # Unet_t hidden

    # 4) Unet output conv (MXU) with (pred + 1)/2 folded in; lane-dense stores.
    o = jnp.dot(w2_ref[...], h_u, preferred_element_type=jnp.float32) + b2_ref[...]
    o = (o + 1.0) * 0.5                                                     # (C, B*HW)
    for b in range(B):
        predx_ref[b] = o[:, b * HW:(b + 1) * HW]

    # 5) Unet_t head: projection on the MXU, per-sample global mean pool (lane
    #    reduce), sigmoid, single (1, B) lane-dense store.
    tproj = jnp.dot(wt2_ref[...], h_t, preferred_element_type=jnp.float32)  # (1, B*HW)
    inv_hw = 1.0 / HW
    logits = [jnp.sum(tproj[:, b * HW:(b + 1) * HW], axis=-1, keepdims=True) * inv_hw
              + bt2_ref[...] for b in range(B)]
    logit = jnp.concatenate(logits, axis=-1)                                # (1, B)
    predt_ref[...] = 1.0 / (1.0 + jnp.exp(-logit))


def fused_forward(t, x0, prefix, wcat, bcat, w2, b2, wt2_row, bt2, *, hidden):
    B, C, HW = x0.shape
    Hd = hidden

    kernel = functools.partial(_fused_forward_kernel, batch=B, hidden=Hd, hw=HW)

    grid_spec = pltpu.PrefetchScalarGridSpec(
        num_scalar_prefetch=1,            # t -> SMEM; drives the in-kernel prefix gather
        grid=(1,),                        # whole batch in a single step
        in_specs=[
            pl.BlockSpec((B, C, HW), lambda i, ts: (0, 0, 0)),        # x0
            pl.BlockSpec(memory_space=pl.ANY),                        # noise prefix (HBM)
            pl.BlockSpec((2 * Hd, C), lambda i, ts: (0, 0)),          # wcat
            pl.BlockSpec((B, 2 * Hd, 1), lambda i, ts: (0, 0, 0)),    # bcat (temb folded)
            pl.BlockSpec((C, Hd), lambda i, ts: (0, 0)),              # w2
            pl.BlockSpec((C, 1), lambda i, ts: (0, 0)),               # b2
            pl.BlockSpec((1, Hd), lambda i, ts: (0, 0)),              # wt2 (row)
            pl.BlockSpec((1, 1), lambda i, ts: (0, 0)),               # bt2
        ],
        out_specs=[
            pl.BlockSpec((B, C, HW), lambda i, ts: (0, 0, 0)),        # pred_clean_x
            pl.BlockSpec((1, B), lambda i, ts: (0, 0)),               # pred_t (lane-dense)
        ],
        scratch_shapes=[
            pltpu.VMEM((B, C, HW), jnp.float32),                      # gathered prefixes
            pltpu.SemaphoreType.DMA((B,)),
        ],
    )

    return pl.pallas_call(
        kernel,
        out_shape=(jax.ShapeDtypeStruct((B, C, HW), jnp.float32),
                   jax.ShapeDtypeStruct((1, B), jnp.float32)),
        grid_spec=grid_spec,
        compiler_params=pltpu.CompilerParams(dimension_semantics=("arbitrary",)),
    )(t, x0, prefix, wcat, bcat, w2, b2, wt2_row, bt2)


# ---------------------------------------------------------------------------
# Model wrapper (parameter setup, prefix-sum construction: plain JAX glue)
# ---------------------------------------------------------------------------
class PallasModel:
    def __init__(self, image_size, in_channels, time_embedding_dim=32,
                 timesteps=8, base_dim=32, dim_mults=(1, 2, 4, 8), seed=42):
        self.image_size = image_size
        self.in_channels = in_channels
        self.timesteps = timesteps
        self.temb_dim = time_embedding_dim
        self.hidden = base_dim
        del dim_mults  # TODO(synk): multi-scale Unet stages not reproducible (source absent)

        k = jax.random.PRNGKey(seed)
        ks = jax.random.split(k, 5)
        s = 0.1
        C, Hd, E = in_channels, base_dim, time_embedding_dim

        self.w_temb = s * jax.random.normal(ks[0], (E, Hd), jnp.float32)
        self.b_temb = jnp.zeros((Hd,), jnp.float32)

        w1 = s * jax.random.normal(ks[1], (Hd, C), jnp.float32)        # Unet layer 1
        wt1 = s * jax.random.normal(ks[3], (Hd, C), jnp.float32)       # Unet_t layer 1
        self.wcat = jnp.concatenate([w1, wt1], axis=0)                 # (2Hd, C), static
        self.b1 = jnp.zeros((Hd,), jnp.float32)
        self.bt1 = jnp.zeros((Hd,), jnp.float32)

        self.w2 = s * jax.random.normal(ks[2], (C, Hd), jnp.float32)   # Unet output conv
        self.b2 = jnp.zeros((C, 1), jnp.float32)
        self.wt2_row = s * jax.random.normal(ks[4], (1, Hd), jnp.float32)  # Unet_t head
        self.bt2 = jnp.zeros((1, 1), jnp.float32)

    def _time_embedding(self, t):
        half = self.temb_dim // 2
        freqs = jnp.exp(-jnp.log(10000.0) * jnp.arange(half, dtype=jnp.float32) / half)
        args = t.astype(jnp.float32)[:, None] * freqs[None, :]
        emb = jnp.concatenate([jnp.sin(args), jnp.cos(args)], axis=-1)   # (B, E)
        return emb @ self.w_temb + self.b_temb                           # (B, Hd)

    def forward(self, x, noise_seq, t_key):
        # x NCHW; noise_seq[i] plays the role of the i-th (stateful)
        # noise_adder.add_train_noise(ori_image) draw of the torch loop.
        B, C, H, W = x.shape
        HW = H * W
        T = self.timesteps
        Hd = self.hidden

        # t = torch.randint(0, timesteps, (B,))
        t = jax.random.randint(t_key, (B,), 0, T, dtype=jnp.int32)

        # Per-sample fused first-layer bias (time embedding folded into Unet half).
        temb = self._time_embedding(t)                                   # (B, Hd)
        b_u = (self.b1[None, :] + temb)[:, :, None]                      # (B, Hd, 1)
        b_t = jnp.broadcast_to(self.bt1[None, :, None], (B, Hd, 1))
        bcat = jnp.concatenate([b_u, b_t], axis=1)                       # (B, 2Hd, 1)

        # Zero-prefixed cumulative noise, batch-major: prefix[b,k] = sum_{j<k} noise_j[b]
        noise = noise_seq.reshape(T, B, C, HW).astype(jnp.float32)
        prefix = jnp.concatenate(
            [jnp.zeros((1, B, C, HW), jnp.float32), jnp.cumsum(noise, axis=0)], axis=0)
        prefix = jnp.transpose(prefix, (1, 0, 2, 3))                     # (B, T+1, C, HW)

        x0 = x.reshape(B, C, HW).astype(jnp.float32)                     # free reshape

        predx, predt = fused_forward(t, x0, prefix, self.wcat, bcat,
                                     self.w2, self.b2, self.wt2_row, self.bt2,
                                     hidden=Hd)

        pred_clean_x = predx.reshape(B, C, H, W)                         # free reshape
        pred_t = predt.reshape(B)
        gt_t = t.astype(jnp.float32) / T
        return pred_clean_x, pred_t, gt_t


if __name__ == "__main__":
    B, C, H, W = 2, 4, 16, 16
    TIMESTEPS = 8

    key = jax.random.PRNGKey(0)
    kx, knoise, kt = jax.random.split(key, 3)
    x = jax.random.uniform(kx, (B, C, H, W), jnp.float32)       # image in [0, 1]
    # deterministic stand-in for the per-iteration noise_adder.add_train_noise draws
    noise_seq = 0.05 * jax.random.normal(knoise, (TIMESTEPS, B, C, H, W), jnp.float32)

    model = PallasModel(image_size=H, in_channels=C, time_embedding_dim=32,
                        timesteps=TIMESTEPS, base_dim=32)

    pred_clean_x, pred_t, gt_t = model.forward(x, noise_seq, kt)
    jax.block_until_ready((pred_clean_x, pred_t, gt_t))

    assert pred_clean_x.shape == (B, C, H, W)
    assert pred_t.shape == (B,)
    assert gt_t.shape == (B,)
    assert bool(jnp.all(jnp.isfinite(pred_clean_x)))
    assert bool(jnp.all(jnp.isfinite(pred_t)))
    print("KERNEL_OK")
</pallas_src>

<mosaic_0001>
module attributes {stable_mosaic.version = 11 : i64} {
  func.func @_fused_forward_kernel(%arg0: i32, %arg1: memref<2xi32, #tpu.memory_space<smem>>, %arg2: memref<2x4x256xf32, #tpu.memory_space<vmem>>, %arg3: memref<2x9x4x256xf32, #tpu.memory_space<any>>, %arg4: memref<64x4xf32, #tpu.memory_space<vmem>>, %arg5: memref<2x64x1xf32, #tpu.memory_space<vmem>>, %arg6: memref<4x32xf32, #tpu.memory_space<vmem>>, %arg7: memref<4x1xf32, #tpu.memory_space<vmem>>, %arg8: memref<1x32xf32, #tpu.memory_space<vmem>>, %arg9: memref<1x1xf32, #tpu.memory_space<vmem>>, %arg10: memref<2x4x256xf32, #tpu.memory_space<vmem>>, %arg11: memref<1x2xf32, #tpu.memory_space<vmem>>, %arg12: memref<2x4x256xf32, #tpu.memory_space<vmem>>, %arg13: memref<2x!tpu.dma_semaphore, #tpu.memory_space<semaphore_mem>>) attributes {dimension_semantics = [#tpu.dimension_semantics<arbitrary>], iteration_bounds = array<i64: 1>, scalar_prefetch = 1 : i64, scratch_operands = 2 : i64, tpu.core_type = #tpu.core_type<tc>, window_params = [{pipeline_mode = #tpu.pipeline_mode<synchronous>, transform_indices = @transform_0, window_bounds = array<i64: 2, 4, 256>}, {}, {pipeline_mode = #tpu.pipeline_mode<synchronous>, transform_indices = @transform_2, window_bounds = array<i64: 64, 4>}, {pipeline_mode = #tpu.pipeline_mode<synchronous>, transform_indices = @transform_3, window_bounds = array<i64: 2, 64, 1>}, {pipeline_mode = #tpu.pipeline_mode<synchronous>, transform_indices = @transform_4, window_bounds = array<i64: 4, 32>}, {pipeline_mode = #tpu.pipeline_mode<synchronous>, transform_indices = @transform_5, window_bounds = array<i64: 4, 1>}, {pipeline_mode = #tpu.pipeline_mode<synchronous>, transform_indices = @transform_6, window_bounds = array<i64: 1, 32>}, {pipeline_mode = #tpu.pipeline_mode<synchronous>, transform_indices = @transform_7, window_bounds = array<i64: 1, 1>}, {pipeline_mode = #tpu.pipeline_mode<synchronous>, transform_indices = @transform_8, window_bounds = array<i64: 2, 4, 256>}, {pipeline_mode = #tpu.pipeline_mode<synchronous>, transform_indices = @transform_9, window_bounds = array<i64: 1, 2>}]} {
    %c0 = arith.constant 0 : index
    %0 = memref.load %arg1[%c0] : memref<2xi32, #tpu.memory_space<smem>>
    %c0_i32 = arith.constant 0 : i32
    %c0_i32_0 = arith.constant 0 : i32
    %c0_i32_1 = arith.constant 0 : i32
    %c0_i32_2 = arith.constant 0 : i32
    %c0_i32_3 = arith.constant 0 : i32
    %1 = tpu.memref_slice %arg3[%c0_i32, %0, %c0_i32_2, %c0_i32_3] : memref<2x9x4x256xf32, #tpu.memory_space<any>> -> memref<1x1x4x256xf32, #tpu.memory_space<any>>
    %2 = tpu.memref_squeeze %1 : memref<1x1x4x256xf32, #tpu.memory_space<any>> -> memref<4x256xf32, #tpu.memory_space<any>>
    %c0_i32_4 = arith.constant 0 : i32
    %c0_i32_5 = arith.constant 0 : i32
    %3 = tpu.memref_slice %arg12[%c0_i32_0, %c0_i32_4, %c0_i32_5] : memref<2x4x256xf32, #tpu.memory_space<vmem>> -> memref<1x4x256xf32, #tpu.memory_space<vmem>>
    %4 = tpu.memref_squeeze %3 : memref<1x4x256xf32, #tpu.memory_space<vmem>> -> memref<4x256xf32, #tpu.memory_space<vmem>>
    %5 = tpu.memref_slice %arg13[%c0_i32_1] : memref<2x!tpu.dma_semaphore, #tpu.memory_space<semaphore_mem>> -> memref<1x!tpu.dma_semaphore, #tpu.memory_space<semaphore_mem>>
    %6 = tpu.memref_squeeze %5 : memref<1x!tpu.dma_semaphore, #tpu.memory_space<semaphore_mem>> -> memref<!tpu.dma_semaphore, #tpu.memory_space<semaphore_mem>>
    tpu.enqueue_dma source(%2 : memref<4x256xf32, #tpu.memory_space<any>>) target(%4 : memref<4x256xf32, #tpu.memory_space<vmem>>) target_semaphore(%6 : memref<!tpu.dma_semaphore, #tpu.memory_space<semaphore_mem>>)
    %c1 = arith.constant 1 : index
    %7 = memref.load %arg1[%c1] : memref<2xi32, #tpu.memory_space<smem>>
    %c1_i32 = arith.constant 1 : i32
    %c1_i32_6 = arith.constant 1 : i32
    %c1_i32_7 = arith.constant 1 : i32
    %c0_i32_8 = arith.constant 0 : i32
    %c0_i32_9 = arith.constant 0 : i32
    %8 = tpu.memref_slice %arg3[%c1_i32, %7, %c0_i32_8, %c0_i32_9] : memref<2x9x4x256xf32, #tpu.memory_space<any>> -> memref<1x1x4x256xf32, #tpu.memory_space<any>>
    %9 = tpu.memref_squeeze %8 : memref<1x1x4x256xf32, #tpu.memory_space<any>> -> memref<4x256xf32, #tpu.memory_space<any>>
    %c0_i32_10 = arith.constant 0 : i32
    %c0_i32_11 = arith.constant 0 : i32
    %10 = tpu.memref_slice %arg12[%c1_i32_6, %c0_i32_10, %c0_i32_11] : memref<2x4x256xf32, #tpu.memory_space<vmem>> -> memref<1x4x256xf32, #tpu.memory_space<vmem>>
    %11 = tpu.memref_squeeze %10 : memref<1x4x256xf32, #tpu.memory_space<vmem>> -> memref<4x256xf32, #tpu.memory_space<vmem>>
    %12 = tpu.memref_slice %arg13[%c1_i32_7] : memref<2x!tpu.dma_semaphore, #tpu.memory_space<semaphore_mem>> -> memref<1x!tpu.dma_semaphore, #tpu.memory_space<semaphore_mem>>
    %13 = tpu.memref_squeeze %12 : memref<1x!tpu.dma_semaphore, #tpu.memory_space<semaphore_mem>> -> memref<!tpu.dma_semaphore, #tpu.memory_space<semaphore_mem>>
    tpu.enqueue_dma source(%9 : memref<4x256xf32, #tpu.memory_space<any>>) target(%11 : memref<4x256xf32, #tpu.memory_space<vmem>>) target_semaphore(%13 : memref<!tpu.dma_semaphore, #tpu.memory_space<semaphore_mem>>)
    %c0_i32_12 = arith.constant 0 : i32
    %c0_i32_13 = arith.constant 0 : i32
    %c0_i32_14 = arith.constant 0 : i32
    %c0_i32_15 = arith.constant 0 : i32
    %c0_i32_16 = arith.constant 0 : i32
    %14 = tpu.memref_slice %arg3[%c0_i32_12, %0, %c0_i32_15, %c0_i32_16] : memref<2x9x4x256xf32, #tpu.memory_space<any>> -> memref<1x1x4x256xf32, #tpu.memory_space<any>>
    %15 = tpu.memref_squeeze %14 : memref<1x1x4x256xf32, #tpu.memory_space<any>> -> memref<4x256xf32, #tpu.memory_space<any>>
    %c0_i32_17 = arith.constant 0 : i32
    %c0_i32_18 = arith.constant 0 : i32
    %16 = tpu.memref_slice %arg12[%c0_i32_13, %c0_i32_17, %c0_i32_18] : memref<2x4x256xf32, #tpu.memory_space<vmem>> -> memref<1x4x256xf32, #tpu.memory_space<vmem>>
    %17 = tpu.memref_squeeze %16 : memref<1x4x256xf32, #tpu.memory_space<vmem>> -> memref<4x256xf32, #tpu.memory_space<vmem>>
    %18 = tpu.memref_slice %arg13[%c0_i32_14] : memref<2x!tpu.dma_semaphore, #tpu.memory_space<semaphore_mem>> -> memref<1x!tpu.dma_semaphore, #tpu.memory_space<semaphore_mem>>
    %19 = tpu.memref_squeeze %18 : memref<1x!tpu.dma_semaphore, #tpu.memory_space<semaphore_mem>> -> memref<!tpu.dma_semaphore, #tpu.memory_space<semaphore_mem>>
    tpu.wait_dma2 semaphore(%19 : memref<!tpu.dma_semaphore, #tpu.memory_space<semaphore_mem>>) src(%15 : memref<4x256xf32, #tpu.memory_space<any>>) dst(%17 : memref<4x256xf32, #tpu.memory_space<vmem>>)
    %c1_i32_19 = arith.constant 1 : i32
    %c1_i32_20 = arith.constant 1 : i32
    %c1_i32_21 = arith.constant 1 : i32
    %c0_i32_22 = arith.constant 0 : i32
    %c0_i32_23 = arith.constant 0 : i32
    %20 = tpu.memref_slice %arg3[%c1_i32_19, %7, %c0_i32_22, %c0_i32_23] : memref<2x9x4x256xf32, #tpu.memory_space<any>> -> memref<1x1x4x256xf32, #tpu.memory_space<any>>
    %21 = tpu.memref_squeeze %20 : memref<1x1x4x256xf32, #tpu.memory_space<any>> -> memref<4x256xf32, #tpu.memory_space<any>>
    %c0_i32_24 = arith.constant 0 : i32
    %c0_i32_25 = arith.constant 0 : i32
    %22 = tpu.memref_slice %arg12[%c1_i32_20, %c0_i32_24, %c0_i32_25] : memref<2x4x256xf32, #tpu.memory_space<vmem>> -> memref<1x4x256xf32, #tpu.memory_space<vmem>>
    %23 = tpu.memref_squeeze %22 : memref<1x4x256xf32, #tpu.memory_space<vmem>> -> memref<4x256xf32, #tpu.memory_space<vmem>>
    %24 = tpu.memref_slice %arg13[%c1_i32_21] : memref<2x!tpu.dma_semaphore, #tpu.memory_space<semaphore_mem>> -> memref<1x!tpu.dma_semaphore, #tpu.memory_space<semaphore_mem>>
    %25 = tpu.memref_squeeze %24 : memref<1x!tpu.dma_semaphore, #tpu.memory_space<semaphore_mem>> -> memref<!tpu.dma_semaphore, #tpu.memory_space<semaphore_mem>>
    tpu.wait_dma2 semaphore(%25 : memref<!tpu.dma_semaphore, #tpu.memory_space<semaphore_mem>>) src(%21 : memref<4x256xf32, #tpu.memory_space<any>>) dst(%23 : memref<4x256xf32, #tpu.memory_space<vmem>>)
    %c0_26 = arith.constant 0 : index
    %c0_27 = arith.constant 0 : index
    %c0_28 = arith.constant 0 : index
    %26 = vector.load %arg2[%c0_26, %c0_27, %c0_28] : memref<2x4x256xf32, #tpu.memory_space<vmem>>, vector<1x4x256xf32>
    %27 = vector.shape_cast %26 : vector<1x4x256xf32> to vector<4x256xf32>
    %c0_29 = arith.constant 0 : index
    %c0_30 = arith.constant 0 : index
    %c0_31 = arith.constant 0 : index
    %28 = vector.load %arg12[%c0_29, %c0_30, %c0_31] : memref<2x4x256xf32, #tpu.memory_space<vmem>>, vector<1x4x256xf32>
    %29 = vector.shape_cast %28 : vector<1x4x256xf32> to vector<4x256xf32>
    %30 = arith.addf %27, %29 : vector<4x256xf32>
    %cst = arith.constant 2.000000e+00 : f32
    %31 = vector.broadcast %cst : f32 to vector<4x256xf32>
    %32 = arith.mulf %30, %31 : vector<4x256xf32>
    %cst_32 = arith.constant 1.000000e+00 : f32
    %33 = vector.broadcast %cst_32 : f32 to vector<4x256xf32>
    %34 = arith.subf %32, %33 : vector<4x256xf32>
    %c1_33 = arith.constant 1 : index
    %c0_34 = arith.constant 0 : index
    %c0_35 = arith.constant 0 : index
    %35 = vector.load %arg2[%c1_33, %c0_34, %c0_35] : memref<2x4x256xf32, #tpu.memory_space<vmem>>, vector<1x4x256xf32>
    %36 = vector.shape_cast %35 : vector<1x4x256xf32> to vector<4x256xf32>
    %c1_36 = arith.constant 1 : index
    %c0_37 = arith.constant 0 : index
    %c0_38 = arith.constant 0 : index
    %37 = vector.load %arg12[%c1_36, %c0_37, %c0_38] : memref<2x4x256xf32, #tpu.memory_space<vmem>>, vector<1x4x256xf32>
    %38 = vector.shape_cast %37 : vector<1x4x256xf32> to vector<4x256xf32>
    %39 = arith.addf %36, %38 : vector<4x256xf32>
    %cst_39 = arith.constant 2.000000e+00 : f32
    %40 = vector.broadcast %cst_39 : f32 to vector<4x256xf32>
    %41 = arith.mulf %39, %40 : vector<4x256xf32>
    %cst_40 = arith.constant 1.000000e+00 : f32
    %42 = vector.broadcast %cst_40 : f32 to vector<4x256xf32>
    %43 = arith.subf %41, %42 : vector<4x256xf32>
    %44 = tpu.concatenate %34, %43 in 1 : vector<4x256xf32>, vector<4x256xf32> -> vector<4x512xf32>
    %c0_41 = arith.constant 0 : index
    %c0_42 = arith.constant 0 : index
    %45 = vector.load %arg4[%c0_41, %c0_42] : memref<64x4xf32, #tpu.memory_space<vmem>>, vector<64x4xf32>
    %cst_43 = arith.constant dense<0.000000e+00> : vector<64x512xf32>
    %46 = tpu.matmul %45, %44, %cst_43 {dimension_numbers = #tpu.dot_dimension_numbers<[1], [0], [0], [1], [0, 0, 1, 1], [], []>} : vector<64x4xf32>, vector<4x512xf32>, vector<64x512xf32> -> vector<64x512xf32>
    %47 = vector.extract_strided_slice %46 {offsets = [0, 0], sizes = [64, 256], strides = [1, 1]} : vector<64x512xf32> to vector<64x256xf32>
    %c0_44 = arith.constant 0 : index
    %c0_45 = arith.constant 0 : index
    %c0_46 = arith.constant 0 : index
    %48 = vector.load %arg5[%c0_44, %c0_45, %c0_46] : memref<2x64x1xf32, #tpu.memory_space<vmem>>, vector<1x64x1xf32>
    %49 = vector.shape_cast %48 : vector<1x64x1xf32> to vector<64x1xf32>
    %50 = vector.broadcast %49 : vector<64x1xf32> to vector<64x256xf32>
    %51 = arith.addf %47, %50 : vector<64x256xf32>
    %cst_47 = arith.constant 0.000000e+00 : f32
    %52 = vector.broadcast %cst_47 : f32 to vector<64x256xf32>
    %53 = arith.maximumf %51, %52 : vector<64x256xf32>
    %54 = vector.extract_strided_slice %46 {offsets = [0, 256], sizes = [64, 256], strides = [1, 1]} : vector<64x512xf32> to vector<64x256xf32>
    %c1_48 = arith.constant 1 : index
    %c0_49 = arith.constant 0 : index
    %c0_50 = arith.constant 0 : index
    %55 = vector.load %arg5[%c1_48, %c0_49, %c0_50] : memref<2x64x1xf32, #tpu.memory_space<vmem>>, vector<1x64x1xf32>
    %56 = vector.shape_cast %55 : vector<1x64x1xf32> to vector<64x1xf32>
    %57 = vector.broadcast %56 : vector<64x1xf32> to vector<64x256xf32>
    %58 = arith.addf %54, %57 : vector<64x256xf32>
    %cst_51 = arith.constant 0.000000e+00 : f32
    %59 = vector.broadcast %cst_51 : f32 to vector<64x256xf32>
    %60 = arith.maximumf %58, %59 : vector<64x256xf32>
    %61 = tpu.concatenate %53, %60 in 1 : vector<64x256xf32>, vector<64x256xf32> -> vector<64x512xf32>
    %62 = vector.extract_strided_slice %61 {offsets = [0, 0], sizes = [32, 512], strides = [1, 1]} : vector<64x512xf32> to vector<32x512xf32>
    %63 = vector.extract_strided_slice %61 {offsets = [32, 0], sizes = [32, 512], strides = [1, 1]} : vector<64x512xf32> to vector<32x512xf32>
    %c0_52 = arith.constant 0 : index
    %c0_53 = arith.constant 0 : index
    %64 = vector.load %arg6[%c0_52, %c0_53] : memref<4x32xf32, #tpu.memory_space<vmem>>, vector<4x32xf32>
    %cst_54 = arith.constant dense<0.000000e+00> : vector<4x512xf32>
    %65 = tpu.matmul %64, %62, %cst_54 {dimension_numbers = #tpu.dot_dimension_numbers<[1], [0], [0], [1], [0, 0, 1, 1], [], []>} : vector<4x32xf32>, vector<32x512xf32>, vector<4x512xf32> -> vector<4x512xf32>
    %c0_55 = arith.constant 0 : index
    %c0_56 = arith.constant 0 : index
    %66 = vector.load %arg7[%c0_55, %c0_56] : memref<4x1xf32, #tpu.memory_space<vmem>>, vector<4x1xf32>
    %67 = vector.broadcast %66 : vector<4x1xf32> to vector<4x512xf32>
    %68 = arith.addf %65, %67 : vector<4x512xf32>
    %cst_57 = arith.constant 1.000000e+00 : f32
    %69 = vector.broadcast %cst_57 : f32 to vector<4x512xf32>
    %70 = arith.addf %68, %69 : vector<4x512xf32>
    %cst_58 = arith.constant 5.000000e-01 : f32
    %71 = vector.broadcast %cst_58 : f32 to vector<4x512xf32>
    %72 = arith.mulf %70, %71 : vector<4x512xf32>
    %73 = vector.extract_strided_slice %72 {offsets = [0, 0], sizes = [4, 256], strides = [1, 1]} : vector<4x512xf32> to vector<4x256xf32>
    %c0_59 = arith.constant 0 : index
    %c0_60 = arith.constant 0 : index
    %c0_61 = arith.constant 0 : index
    %74 = vector.load %arg10[%c0_59, %c0_60, %c0_61] : memref<2x4x256xf32, #tpu.memory_space<vmem>>, vector<1x4x256xf32>
    %75 = vector.shape_cast %74 : vector<1x4x256xf32> to vector<4x256xf32>
    %76 = vector.shape_cast %73 : vector<4x256xf32> to vector<1x4x256xf32>
    tpu.vector_store %arg10[%c0_59, %c0_60, %c0_61], %76 {strides = array<i32>} : memref<2x4x256xf32, #tpu.memory_space<vmem>>, vector<1x4x256xf32>,
    %77 = vector.extract_strided_slice %72 {offsets = [0, 256], sizes = [4, 256], strides = [1, 1]} : vector<4x512xf32> to vector<4x256xf32>
    %c1_62 = arith.constant 1 : index
    %c0_63 = arith.constant 0 : index
    %c0_64 = arith.constant 0 : index
    %78 = vector.load %arg10[%c1_62, %c0_63, %c0_64] : memref<2x4x256xf32, #tpu.memory_space<vmem>>, vector<1x4x256xf32>
    %79 = vector.shape_cast %78 : vector<1x4x256xf32> to vector<4x256xf32>
    %80 = vector.shape_cast %77 : vector<4x256xf32> to vector<1x4x256xf32>
    tpu.vector_store %arg10[%c1_62, %c0_63, %c0_64], %80 {strides = array<i32>} : memref<2x4x256xf32, #tpu.memory_space<vmem>>, vector<1x4x256xf32>,
    %c0_65 = arith.constant 0 : index
    %c0_66 = arith.constant 0 : index
    %81 = vector.load %arg8[%c0_65, %c0_66] : memref<1x32xf32, #tpu.memory_space<vmem>>, vector<1x32xf32>
    %cst_67 = arith.constant dense<0.000000e+00> : vector<1x512xf32>
    %82 = tpu.matmul %81, %63, %cst_67 {dimension_numbers = #tpu.dot_dimension_numbers<[1], [0], [0], [1], [0, 0, 1, 1], [], []>} : vector<1x32xf32>, vector<32x512xf32>, vector<1x512xf32> -> vector<1x512xf32>
    %83 = vector.extract_strided_slice %82 {offsets = [0, 0], sizes = [1, 256], strides = [1, 1]} : vector<1x512xf32> to vector<1x256xf32>
    %cst_68 = arith.constant dense<0.000000e+00> : vector<1xf32>
    %84 = vector.multi_reduction <add>, %83, %cst_68 [1] : vector<1x256xf32> to vector<1xf32>
    %85 = vector.shape_cast %84 : vector<1xf32> to vector<1x1xf32>
    %cst_69 = arith.constant 3.906250e-03 : f32
    %86 = vector.broadcast %cst_69 : f32 to vector<1x1xf32>
    %87 = arith.mulf %85, %86 : vector<1x1xf32>
    %c0_70 = arith.constant 0 : index
    %c0_71 = arith.constant 0 : index
    %88 = vector.load %arg9[%c0_70, %c0_71] : memref<1x1xf32, #tpu.memory_space<vmem>>, vector<1x1xf32>
    %89 = arith.addf %87, %88 : vector<1x1xf32>
    %90 = vector.extract_strided_slice %82 {offsets = [0, 256], sizes = [1, 256], strides = [1, 1]} : vector<1x512xf32> to vector<1x256xf32>
    %cst_72 = arith.constant dense<0.000000e+00> : vector<1xf32>
    %91 = vector.multi_reduction <add>, %90, %cst_72 [1] : vector<1x256xf32> to vector<1xf32>
    %92 = vector.shape_cast %91 : vector<1xf32> to vector<1x1xf32>
    %cst_73 = arith.constant 3.906250e-03 : f32
    %93 = vector.broadcast %cst_73 : f32 to vector<1x1xf32>
    %94 = arith.mulf %92, %93 : vector<1x1xf32>
    %c0_74 = arith.constant 0 : index
    %c0_75 = arith.constant 0 : index
    %95 = vector.load %arg9[%c0_74, %c0_75] : memref<1x1xf32, #tpu.memory_space<vmem>>, vector<1x1xf32>
    %96 = arith.addf %94, %95 : vector<1x1xf32>
    %97 = tpu.concatenate %89, %96 in 1 : vector<1x1xf32>, vector<1x1xf32> -> vector<1x2xf32>
    %cst_76 = arith.constant 0.000000e+00 : f32
    %98 = vector.broadcast %cst_76 : f32 to vector<1x2xf32>
    %99 = arith.subf %98, %97 : vector<1x2xf32>
    %100 = math.exp %99 : vector<1x2xf32>
    %cst_77 = arith.constant 1.000000e+00 : f32
    %101 = vector.broadcast %cst_77 : f32 to vector<1x2xf32>
    %102 = arith.addf %101, %100 : vector<1x2xf32>
    %cst_78 = arith.constant 1.000000e+00 : f32
    %103 = vector.broadcast %cst_78 : f32 to vector<1x2xf32>
    %104 = arith.divf %103, %102 : vector<1x2xf32>
    %c0_79 = arith.constant 0 : index
    %c0_80 = arith.constant 0 : index
    %105 = vector.load %arg11[%c0_79, %c0_80] : memref<1x2xf32, #tpu.memory_space<vmem>>, vector<1x2xf32>
    tpu.vector_store %arg11[%c0_79, %c0_80], %104 {strides = array<i32>} : memref<1x2xf32, #tpu.memory_space<vmem>>, vector<1x2xf32>,
    return
  }
  func.func @transform_0(%arg0: i32, %arg1: memref<2xi32, #tpu.memory_space<smem>>) -> (i32, i32, i32) {
    %c0_i32 = arith.constant 0 : i32
    %c0_i32_0 = arith.constant 0 : i32
    %c0_i32_1 = arith.constant 0 : i32
    %c0_i32_2 = arith.constant 0 : i32
    return %c0_i32, %c0_i32_0, %c0_i32_1 : i32, i32, i32
  }
  func.func @transform_2(%arg0: i32, %arg1: memref<2xi32, #tpu.memory_space<smem>>) -> (i32, i32) {
    %c0_i32 = arith.constant 0 : i32
    %c0_i32_0 = arith.constant 0 : i32
    %c0_i32_1 = arith.constant 0 : i32
    return %c0_i32, %c0_i32_0 : i32, i32
  }
  func.func @transform_3(%arg0: i32, %arg1: memref<2xi32, #tpu.memory_space<smem>>) -> (i32, i32, i32) {
    %c0_i32 = arith.constant 0 : i32
    %c0_i32_0 = arith.constant 0 : i32
    %c0_i32_1 = arith.constant 0 : i32
    %c0_i32_2 = arith.constant 0 : i32
    return %c0_i32, %c0_i32_0, %c0_i32_1 : i32, i32, i32
  }
  func.func @transform_4(%arg0: i32, %arg1: memref<2xi32, #tpu.memory_space<smem>>) -> (i32, i32) {
    %c0_i32 = arith.constant 0 : i32
    %c0_i32_0 = arith.constant 0 : i32
    %c0_i32_1 = arith.constant 0 : i32
    return %c0_i32, %c0_i32_0 : i32, i32
  }
  func.func @transform_5(%arg0: i32, %arg1: memref<2xi32, #tpu.memory_space<smem>>) -> (i32, i32) {
    %c0_i32 = arith.constant 0 : i32
    %c0_i32_0 = arith.constant 0 : i32
    %c0_i32_1 = arith.constant 0 : i32
    return %c0_i32, %c0_i32_0 : i32, i32
  }
  func.func @transform_6(%arg0: i32, %arg1: memref<2xi32, #tpu.memory_space<smem>>) -> (i32, i32) {
    %c0_i32 = arith.constant 0 : i32
    %c0_i32_0 = arith.constant 0 : i32
    %c0_i32_1 = arith.constant 0 : i32
    return %c0_i32, %c0_i32_0 : i32, i32
  }
  func.func @transform_7(%arg0: i32, %arg1: memref<2xi32, #tpu.memory_space<smem>>) -> (i32, i32) {
    %c0_i32 = arith.constant 0 : i32
    %c0_i32_0 = arith.constant 0 : i32
    %c0_i32_1 = arith.constant 0 : i32
    return %c0_i32, %c0_i32_0 : i32, i32
  }
  func.func @transform_8(%arg0: i32, %arg1: memref<2xi32, #tpu.memory_space<smem>>) -> (i32, i32, i32) {
    %c0_i32 = arith.constant 0 : i32
    %c0_i32_0 = arith.constant 0 : i32
    %c0_i32_1 = arith.constant 0 : i32
    %c0_i32_2 = arith.constant 0 : i32
    return %c0_i32, %c0_i32_0, %c0_i32_1 : i32, i32, i32
  }
  func.func @transform_9(%arg0: i32, %arg1: memref<2xi32, #tpu.memory_space<smem>>) -> (i32, i32) {
    %c0_i32 = arith.constant 0 : i32
    %c0_i32_0 = arith.constant 0 : i32
    %c0_i32_1 = arith.constant 0 : i32
    return %c0_i32, %c0_i32_0 : i32, i32
  }
}

</mosaic_0001>

<bundles_post_ra>
// kernel: tpu_custom_call.1
= control target key start
LH: loop header
LB: loop body
LE: loop exit
PB: predicated region body
PF: predicated region fallthrough
CT: control target
= control target key end

     0   :  { %s1398_s0 = inlined_call_operand.vmem [shape: s32[2], index: 0, kind: input, shape index: {}]   ;;  %s1399_s1 = inlined_call_operand.vmem [shape: f32[2,4,256], index: 1, kind: input, shape index: {}]   ;;  %s1400_s2 = inlined_call_operand.vmem [shape: f32[2,9,4,256], index: 2, kind: input, shape index: {}]   ;;  %s1401_s3 = inlined_call_operand.vmem [shape: f32[64,4], index: 3, kind: input, shape index: {}]   ;;  %s1402_s4 = inlined_call_operand.vmem [shape: f32[2,64,1], index: 4, kind: input, shape index: {}]   ;;  %s1403_s5 = inlined_call_operand.vmem [shape: f32[4,32], index: 5, kind: input, shape index: {}]   ;;  %s1404_s6 = inlined_call_operand.vmem [shape: f32[4,1], index: 6, kind: input, shape index: {}]   ;;  %s1405_s7 = inlined_call_operand.vmem [shape: f32[1,32], index: 7, kind: input, shape index: {}]   ;;  %s1406_s9 = inlined_call_operand.hbm [shape: f32[2,4,256], index: 9, kind: output, shape index: {0}]   ;;  %s1407_s10 = inlined_call_operand.hbm [shape: f32[1,2], index: 10, kind: output, shape index: {1}]   ;;  %s1408_s8 = inlined_call_operand.<no memory space> [shape: f32[1,1], index: 8, kind: input, shape index: {}]  }
   0x1   :  { %s16_s15 = sshll.u32 %s1398_s0, 4  ;;  %v20_v0 = vstv %s1408_s8  ;;  %s17_s15 = int_to_ptr.vmem [resolvable:$true] %s16_s15 }
   0x2   :  { %21 = vst [vmem:[#allocation6] sm:$0x1] %v20_v0  ;;  %s1090_s18 = scalar_lea.vmem %s17_s15, 16  ;;  %p1095_p1 = scmp.lt.s32.totalorder %s17_s15, %s17_s15 }
   0x3   :  { %p1091_p0 = scmp.ne.s32.totalorder %s17_s15, %s1090_s18  ;;  %p1096_p2 = scmp.lt.s32.totalorder %s1090_s18, %s1090_s18 }
   0x5   :  { %p1097_p3 = por %p1096_p2, %p1095_p1 }
   0x7   :  { %p1098_p4 = pnand %p1097_p3, %p1091_p0 }
   0x9   :  { %1101 = shalt.err (!%p1098_p4)  }
   0xa   :  { %s1156_s19 = smov [#allocation5]  }
   0xb   :  { %19 = dma.vmem_to_smem %s17_s15, 16, %s1156_s19, [#allocation4] }
   0xc   :  { %1146 = dma.done.wait [#allocation4], 16 }
   0xd   :  { %1147 = vsyncadd [#allocation4], 4294967280 }
   0xe   :  { %23 = sfence }
   0xf   :  { %24 = vsyncpa [#allocation8], 0 }
  0x10   :  { %25 = vsyncpa [#allocation10], 0  ;;  %s40_s0 = sld [smem:[#allocation5]] }
  0x16   :  { %s1042_s20 = sshll.u32 %s40_s0, 3 }
  0x17   :  { %s43_s22 = scalar_lea.vmem %s1400_s2, %s1042_s20 }
  0x18   :  { %v76_v1 = vld [vmem:[%s43_s22] sm:$0xff] }
  0x19   :  { %85 = vsyncadd [#allocation3], 128  ;;  %s1000_s23 = sld [smem:[#allocation5 + $0x1]] }
  0x1f   :  { %s1043_s24 = sshll.u32 %s1000_s23, 3 }
  0x20   :  { %s980_s27 = scalar_lea.vmem %s1400_s2, %s1043_s24 }
  0x21   :  { %v1003_v2 = vld [vmem:[%s980_s27 + $0x48] sm:$0xff] }
  0x22   :  { %134 = vsyncadd [#allocation3 + $0x1], 128 }
  0x23   :  { %1148 = dma.done.wait [#allocation3], 128 }
  0x24   :  { %1149 = vsyncadd [#allocation3], 4294967168 }
  0x25   :  { %1150 = dma.done.wait [#allocation3 + $0x1], 128 }
  0x26   :  { %1151 = vsyncadd [#allocation3 + $0x1], 4294967168  ;;  %v1157_v3 = vmov 0.0   ;;  %v1158_v4 = vmov 0   ;;  %v141_v5 = vld [vmem:[%s1399_s1] sm:$0xff]  ;;  %v1006_v6 = vld [vmem:[%s1399_s1 + $0x8] sm:$0xff] }
  0x27   :  { %262 = vmatprep.mubr.f32.mxu0 %v1157_v3  ;;  %375 = vmatprep.mubr.f32.mxu1 %v1157_v3  ;;  %v143_v7 = vadd.f32 %v141_v5, %v76_v1  ;;  %v149_v8 = vadd.f32 %v1006_v6, %v1003_v2  ;;  %v1028_v11 = vld [vmem:[%s1402_s4 + $0x40] sm:$0xff]  ;;  %v1030_v12 = vld [vmem:[%s1402_s4 + $0x50] sm:$0xff]  ;;  %v1029_v15 = vld [vmem:[%s1402_s4 + $0x48] sm:$0xff]  ;;  %vm189_vm0 = vcmask 1043456   ;;  %vm164_vm1 = vcmask 31744   ;;  %s1159_s13 = smov 1  }
  0x28   :  { %1084 = vset.pattern.permute.xlu0 %v1158_v4  ;;  %1085 = vset.pattern.permute.xlu1 %v1158_v4  ;;  %v156_v18 = vld [vmem:[%s1401_s3] sm:$0xff]  ;;  %v1031_v20 = vld [vmem:[%s1402_s4 + $0x58] sm:$0xff]  ;;  %v157_v21 = vld [vmem:[%s1401_s3 + $0x8] sm:$0xff]  ;;  %vm592_vm2 = vcmask 261120   ;;  %vm903_vm3 = vcmask 1040384  }
  0x29   :  { %v144_v9 = vmul.f32 2.0, %v143_v7  ;;  %v150_v10 = vmul.f32 2.0, %v149_v8  ;;  %515 = vperm.xlu0 %1084, %v1028_v11   ;;  %525 = vperm.xlu1 %1085, %v1030_v12   ;;  %v1032_v19 = vld [vmem:[%s1402_s4 + $0x60] sm:$0xff]  ;;  %v1034_v22 = vld [vmem:[%s1402_s4 + $0x70] sm:$0xff]  ;;  %v1033_v23 = vld [vmem:[%s1402_s4 + $0x68] sm:$0xff] }
  0x2a   :  { %v158_v24 = vld [vmem:[%s1401_s3 + $0x10] sm:$0xff]  ;;  %v424_v25 = vld [vmem:[%s1402_s4] sm:$0xff]  ;;  %v1035_v26 = vld [vmem:[%s1402_s4 + $0x78] sm:$0xff] }
  0x2b   :  { %v1005_v13 = vadd.f32 -1.0, %v144_v9  ;;  %v1007_v14 = vadd.f32 -1.0, %v150_v10  ;;  %v159_v27 = vld [vmem:[%s1401_s3 + $0x18] sm:$0xff]  ;;  %v426_v28 = vld [vmem:[%s1402_s4 + $0x10] sm:$0xff]  ;;  %v425_v29 = vld [vmem:[%s1402_s4 + $0x8] sm:$0xff] }
  0x2c   :  { %v160_v30 = vld [vmem:[%s1401_s3 + $0x20] sm:$0xff]  ;;  %v427_v32 = vld [vmem:[%s1402_s4 + $0x18] sm:$0xff]  ;;  %v161_v33 = vld [vmem:[%s1401_s3 + $0x28] sm:$0xff] }
  0x2d   :  { %v153_v16 = vcombine.high %v1005_v13, %v1005_v13  ;;  %v155_v17 = vcombine.high %v1007_v14, %v1007_v14  ;;  %520 = vperm.xlu0 %1084, %v1029_v15   ;;  %530 = vperm.xlu1 %1085, %v1031_v20   ;;  %v428_v31 = vld [vmem:[%s1402_s4 + $0x20] sm:$0xff]  ;;  %v430_v34 = vld [vmem:[%s1402_s4 + $0x30] sm:$0xff]  ;;  %v429_v35 = vld [vmem:[%s1402_s4 + $0x28] sm:$0xff] }
  0x2e   :  { %v162_v36 = vld [vmem:[%s1401_s3 + $0x30] sm:$0xff]  ;;  %v431_v37 = vld [vmem:[%s1402_s4 + $0x38] sm:$0xff] }
  0x2f   :  { %1008 = vmatprep.subr.msk.mxu0 %vm189_vm0, %v153_v16  ;;  %1018 = vmatprep.subr.msk.mxu1 %vm189_vm0, %v155_v17  ;;  %v163_v38 = vld [vmem:[%s1401_s3 + $0x38] sm:$0xff] }
  0x30   :  { %1009 = vmatpush1.msk.msra.mxu0 %vm189_vm0, %v1005_v13  ;;  %1019 = vmatpush1.msk.msra.mxu1 %vm189_vm0, %v1007_v14 }
  0x31   :  { %1010 = vmatmul.mubr.msk.f32.vlgmr.msra.gmra.mrb[0].mxu0 %vm164_vm1, %v156_v18  ;;  %1020 = vmatmul.mubr.msk.f32.vlgmr.msra.gmra.mrb[0].mxu1 %vm164_vm1, %v156_v18 }
  0x32   :  { %268 = vmatprep.mubr.f32.mxu0 %v1157_v3  ;;  %381 = vmatprep.mubr.f32.mxu1 %v1157_v3 }
  0x33   :  { %535 = vperm.xlu0 %1084, %v1032_v19   ;;  %540 = vperm.xlu1 %1085, %v1033_v23  }
  0x35   :  { %1011 = vmatmul.mubr.msk.f32.gmra.mrb[2].mxu0 %vm164_vm1, %v157_v21  ;;  %1021 = vmatmul.mubr.msk.f32.gmra.mrb[2].mxu1 %vm164_vm1, %v157_v21 }
  0x36   :  { %274 = vmatprep.mubr.f32.mxu0 %v1157_v3  ;;  %387 = vmatprep.mubr.f32.mxu1 %v1157_v3 }
  0x37   :  { %545 = vperm.xlu0 %1084, %v1034_v22   ;;  %550 = vperm.xlu1 %1085, %v1035_v26  }
  0x39   :  { %1012 = vmatmul.mubr.msk.f32.gmra.mrb[4].mxu0 %vm164_vm1, %v158_v24  ;;  %1022 = vmatmul.mubr.msk.f32.gmra.mrb[4].mxu1 %vm164_vm1, %v158_v24 }
  0x3a   :  { %280 = vmatprep.mubr.f32.mxu0 %v1157_v3  ;;  %393 = vmatprep.mubr.f32.mxu1 %v1157_v3 }
  0x3b   :  { %434 = vperm.xlu0 %1084, %v424_v25   ;;  %439 = vperm.xlu1 %1085, %v425_v29  }
  0x3d   :  { %1013 = vmatmul.mubr.msk.f32.gmra.mrb[6].mxu0 %vm164_vm1, %v159_v27  ;;  %1023 = vmatmul.mubr.msk.f32.gmra.mrb[6].mxu1 %vm164_vm1, %v159_v27 }
  0x3e   :  { %286 = vmatprep.mubr.f32.mxu0 %v1157_v3  ;;  %399 = vmatprep.mubr.f32.mxu1 %v1157_v3 }
  0x3f   :  { %444 = vperm.xlu0 %1084, %v426_v28   ;;  %449 = vperm.xlu1 %1085, %v427_v32  }
  0x41   :  { %1014 = vmatmul.mubr.msk.f32.gmra.mrb[8].mxu0 %vm164_vm1, %v160_v30  ;;  %1024 = vmatmul.mubr.msk.f32.gmra.mrb[8].mxu1 %vm164_vm1, %v160_v30 }
  0x42   :  { %292 = vmatprep.mubr.f32.mxu0 %v1157_v3  ;;  %405 = vmatprep.mubr.f32.mxu1 %v1157_v3 }
  0x43   :  { %454 = vperm.xlu0 %1084, %v428_v31   ;;  %459 = vperm.xlu1 %1085, %v429_v35  }
  0x45   :  { %1015 = vmatmul.mubr.msk.f32.gmra.mrb[10].mxu0 %vm164_vm1, %v161_v33  ;;  %1025 = vmatmul.mubr.msk.f32.gmra.mrb[10].mxu1 %vm164_vm1, %v161_v33 }
  0x46   :  { %298 = vmatprep.mubr.f32.mxu0 %v1157_v3  ;;  %411 = vmatprep.mubr.f32.mxu1 %v1157_v3 }
  0x47   :  { %464 = vperm.xlu0 %1084, %v430_v34   ;;  %469 = vperm.xlu1 %1085, %v431_v37  }
  0x49   :  { %1016 = vmatmul.mubr.msk.f32.gmra.mrb[12].mxu0 %vm164_vm1, %v162_v36  ;;  %1026 = vmatmul.mubr.msk.f32.gmra.mrb[12].mxu1 %vm164_vm1, %v162_v36 }
  0x4a   :  { %304 = vmatprep.mubr.f32.mxu0 %v1157_v3  ;;  %417 = vmatprep.mubr.f32.mxu1 %v1157_v3 }
  0x4d   :  { %1017 = vmatmul.mubr.msk.f32.gmra.mrb[14].mxu0 %vm164_vm1, %v163_v38  ;;  %1027 = vmatmul.mubr.msk.f32.gmra.mrb[14].mxu1 %vm164_vm1, %v163_v38 }
  0x4e   :  { %660 = vmatprep.mubr.f32.mxu0 %v1157_v3  ;;  %731 = vmatprep.mubr.f32.mxu1 %v1157_v3 }
  0xa8   :  { %v516_v39 = vpop.permute.xlu0 %515  ;;  %v526_v40 = vpop.permute.xlu1 %525 }
  0xac   :  { %v521_v41 = vpop.permute.xlu0 %520  ;;  %v531_v42 = vpop.permute.xlu1 %530 }
  0xb2   :  { %v1343_v43 = vpop.permute.xlu0 %535  ;;  %v1345_v44 = vpop.permute.xlu1 %540 }
  0xb6   :  { %v1347_v45 = vpop.permute.xlu0 %545  ;;  %v1349_v46 = vpop.permute.xlu1 %550 }
  0xba   :  { %v435_v47 = vpop.permute.xlu0 %434  ;;  %v440_v55 = vpop.permute.xlu1 %439 }
  0xbe   :  { %v445_v4 = vpop.permute.xlu0 %444  ;;  %v450_v21 = vpop.permute.xlu1 %449 }
 0x104   :  { %v264_v48 = vpop.f32.mrb[0].mxu0  ;;  %v377_v49 = vpop.f32.mrb[0].mxu1 }
 0x105   :  { %v472_v50 = vadd.f32 %v435_v47, %v264_v48  ;;  %v266_v51 = vpop.f32.mrb[1].mxu0  ;;  %v379_v52 = vpop.f32.mrb[1].mxu1  ;;  %v553_v54 = vadd.f32 %v516_v39, %v377_v49 }
 0x106   :  { %v473_v53 = vadd.f32 %v435_v47, %v266_v51  ;;  %v554_v56 = vadd.f32 %v516_v39, %v379_v52  ;;  %v455_v51 = vpop.permute.xlu0 %454 }
 0x107   :  { %v488_v59 = vmax.f32 %v472_v50, 0.0  ;;  %v569_v5 = vmax.f32 %v553_v54, 0.0  ;;  %v460_v54 = vpop.permute.xlu1 %459 }
 0x108   :  { %v270_v57 = vpop.f32.mrb[2].mxu0  ;;  %v383_v58 = vpop.f32.mrb[2].mxu1  ;;  %v489_v0 = vmax.f32 %v473_v53, 0.0  ;;  %v570_v8 = vmax.f32 %v554_v56, 0.0 }
 0x109   :  { %v474_v60 = vadd.f32 %v440_v55, %v270_v57  ;;  %v555_v61 = vadd.f32 %v521_v41, %v383_v58  ;;  %v272_v62 = vpop.f32.mrb[3].mxu0  ;;  %v385_v63 = vpop.f32.mrb[3].mxu1 }
 0x10a   :  { %v475_v1 = vadd.f32 %v440_v55, %v272_v62  ;;  %v556_v2 = vadd.f32 %v521_v41, %v385_v63 }
 0x10b   :  { %v490_v6 = vmax.f32 %v474_v60, 0.0  ;;  %v571_v7 = vmax.f32 %v555_v61, 0.0 }
 0x10c   :  { %v491_v9 = vmax.f32 %v475_v1, 0.0  ;;  %v572_v10 = vmax.f32 %v556_v2, 0.0  ;;  %v276_v11 = vpop.f32.mrb[4].mxu0  ;;  %v389_v12 = vpop.f32.mrb[4].mxu1 }
 0x10d   :  { %v1046_v13 = vpack.c.bf16 %v490_v6, %v488_v59  ;;  %v1054_v14 = vpack.c.bf16 %v571_v7, %v569_v5  ;;  %v476_v15 = vadd.f32 %v445_v4, %v276_v11  ;;  %v278_v16 = vpop.f32.mrb[5].mxu0  ;;  %v391_v17 = vpop.f32.mrb[5].mxu1  ;;  %v557_v22 = vadd.f32 %v526_v40, %v389_v12 }
 0x10e   :  { %v1044_v18 = vpack.c.bf16 %v491_v9, %v489_v0  ;;  %v1052_v19 = vpack.c.bf16 %v572_v10, %v570_v8  ;;  %v477_v20 = vadd.f32 %v445_v4, %v278_v16  ;;  %v558_v24 = vadd.f32 %v526_v40, %v391_v17  ;;  %v585_v0 = vld [vmem:[%s1403_s5] sm:$0xf] }
 0x10f   :  { %v492_v26 = vmax.f32 %v476_v15, 0.0  ;;  %v573_v35 = vmax.f32 %v557_v22, 0.0 }
 0x110   :  { %v282_v23 = vpop.f32.mrb[6].mxu0  ;;  %1045 = vmatprep.subr.bf16.mxu0 %v1044_v18  ;;  %1053 = vmatprep.subr.bf16.mxu1 %v1052_v19  ;;  %v395_v25 = vpop.f32.mrb[6].mxu1  ;;  %v493_v31 = vmax.f32 %v477_v20, 0.0  ;;  %v574_v38 = vmax.f32 %v558_v24, 0.0 }
 0x111   :  { %v478_v27 = vadd.f32 %v450_v21, %v282_v23  ;;  %v284_v28 = vpop.f32.mrb[7].mxu0  ;;  %1047 = vmatpush1.bf16.msra.mxu0 %v1046_v13  ;;  %1055 = vmatpush1.bf16.msra.mxu1 %v1054_v14  ;;  %v559_v29 = vadd.f32 %v531_v42, %v395_v25  ;;  %v397_v30 = vpop.f32.mrb[7].mxu1 }
 0x112   :  { %v479_v32 = vadd.f32 %v450_v21, %v284_v28  ;;  %v560_v33 = vadd.f32 %v531_v42, %v397_v30  ;;  %v470_v19 = vpop.permute.xlu1 %469 }
 0x113   :  { %v494_v34 = vmax.f32 %v478_v27, 0.0  ;;  %v575_v36 = vmax.f32 %v559_v29, 0.0 }
 0x114   :  { %v495_v37 = vmax.f32 %v479_v32, 0.0  ;;  %v576_v39 = vmax.f32 %v560_v33, 0.0  ;;  %v288_v41 = vpop.f32.mrb[8].mxu0  ;;  %v401_v47 = vpop.f32.mrb[8].mxu1 }
 0x115   :  { %v1050_v40 = vpack.c.bf16 %v494_v34, %v492_v26  ;;  %v1058_v48 = vpack.c.bf16 %v575_v36, %v573_v35  ;;  %v290_v49 = vpop.f32.mrb[9].mxu0  ;;  %v403_v50 = vpop.f32.mrb[9].mxu1  ;;  %v480_v55 = vadd.f32 %v455_v51, %v288_v41  ;;  %v561_v56 = vadd.f32 %v1343_v43, %v401_v47 }
 0x116   :  { %v1048_v52 = vpack.c.bf16 %v495_v37, %v493_v31  ;;  %v1056_v53 = vpack.c.bf16 %v576_v39, %v574_v38  ;;  %v481_v42 = vadd.f32 %v455_v51, %v290_v49  ;;  %v562_v57 = vadd.f32 %v1343_v43, %v403_v50 }
 0x117   :  { %v496_v43 = vmax.f32 %v480_v55, 0.0  ;;  %v577_v4 = vmax.f32 %v561_v56, 0.0 }
 0x118   :  { %v294_v58 = vpop.f32.mrb[10].mxu0  ;;  %v407_v59 = vpop.f32.mrb[10].mxu1  ;;  %1049 = vmatprep.subr.bf16.mxu0 %v1048_v52  ;;  %1057 = vmatprep.subr.bf16.mxu1 %v1056_v53  ;;  %v497_v7 = vmax.f32 %v481_v42, 0.0  ;;  %v578_v8 = vmax.f32 %v562_v57, 0.0 }
 0x119   :  { %v482_v60 = vadd.f32 %v460_v54, %v294_v58  ;;  %v563_v61 = vadd.f32 %v1345_v44, %v407_v59  ;;  %v296_v62 = vpop.f32.mrb[11].mxu0  ;;  %v409_v63 = vpop.f32.mrb[11].mxu1  ;;  %1051 = vmatpush1.bf16.msra.mxu0 %v1050_v40  ;;  %1059 = vmatpush1.bf16.msra.mxu1 %v1058_v48 }
 0x11a   :  { %v483_v1 = vadd.f32 %v460_v54, %v296_v62  ;;  %v564_v2 = vadd.f32 %v1345_v44, %v409_v63  ;;  %v465_v44 = vpop.permute.xlu0 %464 }
 0x11b   :  { %v498_v5 = vmax.f32 %v482_v60, 0.0  ;;  %v579_v6 = vmax.f32 %v563_v61, 0.0  ;;  %v586_v60 = vld [vmem:[%s1404_s6] sm:$0xf]  ;;  %s1160_s6 = smov [#allocation7]  }
 0x11c   :  { %v499_v9 = vmax.f32 %v483_v1, 0.0  ;;  %v580_v10 = vmax.f32 %v564_v2, 0.0  ;;  %v300_v11 = vpop.f32.mrb[12].mxu0  ;;  %v413_v12 = vpop.f32.mrb[12].mxu1  ;;  %1036 = vmatmul.mubr.msk.f32.vlgmr.msra.gmra.mrb[16].mxu0 %vm592_vm2, %v585_v0  ;;  %1037 = vmatmul.mubr.msk.f32.vlgmr.msra.gmra.mrb[16].mxu1 %vm592_vm2, %v585_v0  ;;  %v910_v61 = vld [vmem:[#allocation6] sm:$0x1] }
 0x11d   :  { %v1062_v13 = vpack.c.bf16 %v498_v5, %v496_v43  ;;  %v1070_v14 = vpack.c.bf16 %v579_v6, %v577_v4  ;;  %v302_v15 = vpop.f32.mrb[13].mxu0  ;;  %v415_v16 = vpop.f32.mrb[13].mxu1  ;;  %825 = vmatprep.mubr.f32.mxu0 %v1157_v3  ;;  %896 = vmatprep.mubr.f32.mxu1 %v1157_v3  ;;  %v484_v20 = vadd.f32 %v465_v44, %v300_v11  ;;  %s938_s14 = sshll.u32 %s1160_s6, 4  ;;  %s939_s14 = int_to_ptr.vmem [resolvable:$true] %s938_s14 }
 0x11e   :  { %v1060_v17 = vpack.c.bf16 %v499_v9, %v497_v7  ;;  %v1068_v18 = vpack.c.bf16 %v580_v10, %v578_v8  ;;  %v565_v21 = vadd.f32 %v1347_v45, %v413_v12  ;;  %v485_v22 = vadd.f32 %v465_v44, %v302_v15  ;;  %s1102_s15 = scalar_lea.vmem %s939_s14, 256  ;;  %p1107_p6 = scmp.lt.s32.totalorder %s939_s14, %s939_s14 }
 0x11f   :  { %v566_v23 = vadd.f32 %v1347_v45, %v415_v16  ;;  %v500_v31 = vmax.f32 %v484_v20, 0.0  ;;  %p1103_p5 = scmp.ne.s32.totalorder %s939_s14, %s1102_s15  ;;  %p1108_p7 = scmp.lt.s32.totalorder %s1102_s15, %s1102_s15 }
 0x120   :  { %v306_v24 = vpop.f32.mrb[14].mxu0  ;;  %v419_v25 = vpop.f32.mrb[14].mxu1  ;;  %1061 = vmatprep.subr.bf16.mxu0 %v1060_v17  ;;  %1069 = vmatprep.subr.bf16.mxu1 %v1068_v18  ;;  %v581_v32 = vmax.f32 %v565_v21, 0.0  ;;  %v501_v35 = vmax.f32 %v485_v22, 0.0 }
 0x121   :  { %v486_v26 = vadd.f32 %v470_v19, %v306_v24  ;;  %v567_v27 = vadd.f32 %v1349_v46, %v419_v25  ;;  %v308_v28 = vpop.f32.mrb[15].mxu0  ;;  %v421_v29 = vpop.f32.mrb[15].mxu1  ;;  %1063 = vmatpush1.bf16.msra.mxu0 %v1062_v13  ;;  %1071 = vmatpush1.bf16.msra.mxu1 %v1070_v14  ;;  %v582_v45 = vmax.f32 %v566_v23, 0.0  ;;  %p1109_p8 = por %p1108_p7, %p1107_p6 }
 0x122   :  { %v487_v30 = vadd.f32 %v470_v19, %v308_v28  ;;  %v568_v3 = vadd.f32 %v1349_v46, %v421_v29  ;;  %v757_v46 = vld [vmem:[%s1405_s7] sm:$0x1] }
 0x123   :  { %v502_v33 = vmax.f32 %v486_v26, 0.0  ;;  %v583_v34 = vmax.f32 %v567_v27, 0.0  ;;  %p1110_p9 = pnand %p1109_p8, %p1103_p5 }
 0x124   :  { %v503_v36 = vmax.f32 %v487_v30, 0.0  ;;  %v584_v37 = vmax.f32 %v568_v3, 0.0 }
 0x125   :  { %v1066_v38 = vpack.c.bf16 %v502_v33, %v500_v31  ;;  %v1074_v39 = vpack.c.bf16 %v583_v34, %v581_v32 }
 0x126   :  { %v1064_v41 = vpack.c.bf16 %v503_v36, %v501_v35  ;;  %v1072_v47 = vpack.c.bf16 %v584_v37, %v582_v45 }
 0x128   :  { %1065 = vmatprep.subr.bf16.mxu0 %v1064_v41  ;;  %1073 = vmatprep.subr.bf16.mxu1 %v1072_v47 }
 0x129   :  { %1067 = vmatpush1.bf16.msra.mxu0 %v1066_v38  ;;  %1075 = vmatpush1.bf16.msra.mxu1 %v1074_v39 }
 0x12c   :  { %1038 = vmatmul.mubr.msk.f32.vlgmr.msra.gmra.mrb[18].mxu0 %vm592_vm2, %v757_v46  ;;  %1039 = vmatmul.mubr.msk.f32.vlgmr.msra.gmra.mrb[18].mxu1 %vm592_vm2, %v757_v46 }
 0x1ef   :  { %v662_v40 = vpop.f32.mrb[16].mxu0  ;;  %v733_v48 = vpop.f32.mrb[16].mxu1 }
 0x1f0   :  { %v664_v49 = vpop.f32.mrb[17].mxu0  ;;  %v735_v50 = vpop.f32.mrb[17].mxu1 }
 0x1ff   :  { %v827_v51 = vpop.f32.mrb[18].mxu0  ;;  %v898_v52 = vpop.f32.mrb[18].mxu1 }
 0x200   :  { %v904_v53 = vsel %vm903_vm3, %v827_v51, 0.0  ;;  %v829_v54 = vpop.f32.mrb[19].mxu0  ;;  %v912_v55 = vsel %vm903_vm3, %v898_v52, 0.0  ;;  %v900_v56 = vpop.f32.mrb[19].mxu1 }
 0x201   :  { %v905_v42 = vsel %vm903_vm3, %v829_v54, 0.0  ;;  %v913_v57 = vsel %vm903_vm3, %v900_v56, 0.0 }
 0x202   :  { %v906_v58 = vadd.f32 %v905_v42, %v904_v53  ;;  %v914_v59 = vadd.f32 %v913_v57, %v912_v55 }
 0x204   :  { %907 = vadd.xlane.f32.xlu1 %v906_v58  ;;  %915 = vadd.xlane.f32.xlu0 %v914_v59 }
 0x215   :  { %589 = vperm.xlu1 %1085, %v586_v60  }
 0x291   :  { %v908_v62 = vpop.xlane.xlu1 %907  ;;  %v916_v63 = vpop.xlane.xlu0 %915 }
 0x292   :  { %v909_v0 = vmul.f32 0.00390625, %v908_v62  ;;  %v917_v1 = vmul.f32 0.00390625, %v916_v63 }
 0x294   :  { %v911_v2 = vadd.f32 %v910_v61, %v909_v0  ;;  %v918_v43 = vadd.f32 %v917_v1, %v910_v61 }
 0x295   :  { %v590_v4 = vpop.permute.xlu1 %589 }
 0x296   :  { %v663_v5 = vadd.f32 %v662_v40, %v590_v4  ;;  %v665_v6 = vadd.f32 %v664_v49, %v590_v4  ;;  %v734_v7 = vadd.f32 %v733_v48, %v590_v4  ;;  %v736_v8 = vadd.f32 %v735_v50, %v590_v4  ;;  %920 = vrot.lane.b32.xlu0 %v918_v43, %s1159_s13 }
 0x298   :  { %v738_v9 = vadd.f32 1.0, %v663_v5  ;;  %v739_v10 = vadd.f32 1.0, %v665_v6  ;;  %v740_v11 = vadd.f32 1.0, %v734_v7  ;;  %v741_v12 = vadd.f32 1.0, %v736_v8 }
 0x29a   :  { %v742_v13 = vmul.f32 0.5, %v738_v9  ;;  %v743_v14 = vmul.f32 0.5, %v739_v10  ;;  %v744_v15 = vmul.f32 0.5, %v740_v11  ;;  %v745_v16 = vmul.f32 0.5, %v741_v12 }
 0x29c   :  { %v748_v44 = vcombine.low %v742_v13, %v743_v14  ;;  %v753_v17 = vcombine.low %v744_v15, %v745_v16 }
 0x29e   :  { %750 = vst [vmem:[#allocation7] sm:$0xff] %v748_v44  ;;  %756 = vst [vmem:[#allocation7 + $0x8] sm:$0xff] %v753_v17 }
 0x29f   :  { %1113 = shalt.err (!%p1110_p9)
}
 0x2a0   :  { %s1114_s17 = scalar_lea.hbm %s1406_s9, 256 }
 0x2a1   :  { %p1115_p10 = scmp.ne.s32.totalorder %s1406_s9, %s1114_s17  ;;  %p1118_p11 = scmp.lt.u32.totalorder %s1114_s17, %s1406_s9 }
 0x2a3   :  { %p1120_p12 = pnand %p1118_p11, %p1115_p10 }
 0x2a5   :  { %1123 = shalt.err (!%p1120_p12)
}
 0x2a6   :  { %s1161_s21 = smov 128   ;;  %s1162_s8 = smov 8   ;;  %vm923_vm4 = vcmask 7168   ;;  %vm931_vm5 = vcmask 8192  }
 0x2a7   :  { %944 = dma.vmem_to_hbm [thread:$0]  %s939_s14, 256, %s1406_s9, [#allocation8], %s1161_s21, %s1161_s21, %s1162_s8  }
 0x2a8   :  { %s1163_s24 = smov [#allocation9]  }
 0x2a9   :  { %s951_s25 = sshll.u32 %s1163_s24, 4  ;;  %s952_s25 = int_to_ptr.vmem [resolvable:$true] %s951_s25 }
 0x2aa   :  { %s1124_s26 = scalar_lea.vmem %s952_s25, 16  ;;  %s1128_s27 = scalar_lea.vmem %s952_s25, 32 }
 0x2ab   :  { %p1125_p13 = scmp.ne.s32.totalorder %s952_s25, %s1124_s26  ;;  %p1129_p0 = scmp.lt.s32.totalorder %s952_s25, %s952_s25 }
 0x2ac   :  { %p1130_p1 = scmp.lt.s32.totalorder %s1128_s27, %s1124_s26 }
 0x2ae   :  { %p1131_p2 = por %p1130_p1, %p1129_p0 }
 0x2b0   :  { %p1132_p3 = pnand %p1131_p2, %p1125_p13 }
 0x308   :  { %v921_v18 = vpop.permute.xlu0 %920 }
 0x309   :  { %v924_v19 = vsel %vm923_vm4, %v911_v2, %v921_v18 }
 0x30a   :  { %v925_v20 = vsub.f32 0.0, %v924_v19 }
 0x30c   :  { %v926_v21 = vmul.f32 1.442695, %v925_v20 }
 0x30e   :  { %1086 = vpow2.f32 %v926_v21 }
 0x318   :  { %v1087_v22 = vpop.eup %1086 }
 0x319   :  { %v928_v23 = vadd.f32 1.0, %v1087_v22 }
 0x31b   :  { %1088 = vrcp.f32 %v928_v23 }
 0x325   :  { %v1089_v24 = vpop.eup %1088 }
 0x326   :  { %932 = vst.msk [vmem:[#allocation9] sm:$0x1] %vm931_vm5, %v1089_v24 }
 0x327   :  { %1135 = shalt.err (!%p1132_p3)
}
 0x328   :  { %s1136_s29 = scalar_lea.hbm %s1407_s10, 16 }
 0x329   :  { %p1137_p4 = scmp.ne.s32.totalorder %s1407_s10, %s1136_s29  ;;  %p1140_p5 = scmp.lt.u32.totalorder %s1136_s29, %s1407_s10 }
 0x32b   :  { %p1142_p6 = pnand %p1140_p5, %p1137_p4 }
 0x32d   :  { %1145 = shalt.err (!%p1142_p6)
}
 0x32e   :  { %954 = dma.vmem_to_hbm [thread:$0]  %s952_s25, 16, %s1407_s10, [#allocation10]  }
 0x32f   :  { %1152 = dma.done.wait [#allocation8], 256  }
 0x330   :  { %1153 = vsyncadd [#allocation8], 4294967040 }
 0x331   :  { %1154 = dma.done.wait [#allocation10], 16  }
 0x332   :  { %1155 = vsyncadd [#allocation10], 4294967280 }
 0x333   :  { %961 = vsyncpa [#allocation8], 1 }
 0x334   :  { %962 = vsyncpa [#allocation10], 1 }
 0x335   :  { %963 = vsyncmov [#allocation3] }
 0x338   :  { %s964_s7 = vpop.sfrf %963 }
 0x339   :  { %p1040_p7 = scmp.ne.s32.totalorder %s964_s7, 0 }
 0x33b   :  { %968 = shalt.err (%p1040_p7)  }
 0x33c   :  { %970 = vsyncmov [#allocation3 + $0x1] }
 0x33f   :  { %s971_s12 = vpop.sfrf %970 }
 0x340   :  { %p1041_p8 = scmp.ne.s32.totalorder %s971_s12, 0 }
 0x342   :  { %975 = shalt.err (%p1041_p8)  }

</bundles_post_ra>
